<compile_context>
chip_gen: v5e
topology: v5e:2x2
jax: 0.10.0
libtpu: 0.0.40
codegen_flags: <defaults>
</compile_context>

<pallas_src>
import functools

import jax
import jax.numpy as jnp
from jax.experimental import pallas as pl
from jax.experimental.pallas import tpu as pltpu


def _sigmoid_from_tanh(x):
    # sigmoid(x) == 0.5 * tanh(0.5 * x) + 0.5 : one EUP transcendental/elem.
    # TODO(synk): on v6e/v7x with bf16 output, a bf16 tanh would double EUP
    # throughput; kept f32 here so the same code is correct on v5e (no bf16 EUP).
    return 0.5 * jnp.tanh(0.5 * x) + 0.5


def _decoder_kernel_streamed(z_row_ref, zt_col_ref, adj_ref):
    """One (tm, tn) output tile: z_row (tm, D) @ zt_col (D, tn), then sigmoid."""
    logits = jnp.dot(
        z_row_ref[...], zt_col_ref[...], preferred_element_type=jnp.float32
    )
    adj_ref[...] = _sigmoid_from_tanh(logits).astype(adj_ref.dtype)


def _decoder_kernel_resident(z_row_ref, zt_ref, adj_ref, *, tn):
    """Same, but zt (D, N) is fully resident in VMEM; slice the column panel.

    The lane-dim dynamic slice starts at a multiple of 128 -> pure addressing,
    no data movement."""
    j = pl.program_id(1)
    col_start = pl.multiple_of(j * tn, 128)
    logits = jnp.dot(
        z_row_ref[...],
        zt_ref[:, pl.ds(col_start, tn)],
        preferred_element_type=jnp.float32,
    )
    adj_ref[...] = _sigmoid_from_tanh(logits).astype(adj_ref.dtype)


def _largest_divisor_tile(n, pref, align):
    """Largest multiple of `align` dividing n that is <= pref (n % align == 0)."""
    t = (min(pref, n) // align) * align
    while t >= align and n % t:
        t -= align
    return max(t, align)


def inner_product_decoder(
    z,
    *,
    dropout=0.0,
    training=False,
    rng=None,
    out_dtype=None,
    compute_dtype=None,
    tm=512,
    tn=512,
    resident_col_bytes=4 << 20,
):
    """adj = sigmoid(dropout(z) @ dropout(z).T).

    compute_dtype: optionally cast z (e.g. jnp.bfloat16) before the kernel —
                   MXU-native inputs, half the input DMA; f32 accumulation.
    out_dtype:     output dtype (default: same as the (possibly cast) input);
                   bf16 halves the dominant N*N HBM write for inference.
    """
    if training and dropout > 0.0:
        if rng is None:
            raise ValueError("training=True with dropout>0 requires an `rng` key")
        keep = 1.0 - float(dropout)
        mask = jax.random.bernoulli(rng, p=keep, shape=z.shape)
        z = jnp.where(mask, z / keep, jnp.zeros((), z.dtype)).astype(z.dtype)
        # TODO(synk): fuse the dropout mask in-kernel with pltpu.prng_seed /
        # stateful_bernoulli; the wrapper pass is only O(N*D) vs the O(N^2) output.

    if compute_dtype is not None:
        z = z.astype(compute_dtype)

    N, D = z.shape
    out_dtype = z.dtype if out_dtype is None else jnp.dtype(out_dtype)
    in_itemsize = jnp.dtype(z.dtype).itemsize
    out_itemsize = jnp.dtype(out_dtype).itemsize

    # Pad N to a multiple of 128 (only when needed) so output tiles are
    # lane-dense and the tile search never degenerates to a (tm, N) block.
    # Padded rows produce sigmoid(0)=0.5 and are sliced off afterwards.
    N_pad = ((N + 127) // 128) * 128
    z_p = z if N_pad == N else jnp.zeros((N_pad, D), z.dtype).at[:N].set(z)

    # One-time wrapper transpose -> (D, N_pad): kernel does the MXU-native
    # (tm, D) @ (D, tn) contraction; no per-step transpose through the XLU.
    zt = z_p.T

    # --- tile selection -----------------------------------------------------
    # 512-wide output tiles already sit at ~85% of HBM roofline; bigger tiles
    # buy ~1% for 4x the VMEM — spend that VMEM on pinning zt instead.
    tn = _largest_divisor_tile(N_pad, tn, 128)
    if N_pad // tn >= 2:
        # j axis already has >= 2 parallel blocks -> megacore has work;
        # don't shrink the row tile (that only adds grid-step overhead).
        tm = _largest_divisor_tile(N_pad, tm, 8)
    else:
        # Single j block: cap tm so the i axis has >= 2 blocks when possible
        # (keeps both v7x TensorCores busy; negligible cost on 1-TC v5e/v6e
        # since it only triggers for small N).
        tm = _largest_divisor_tile(N_pad, min(tm, max(8, N_pad // 2)), 8)

    grid = (N_pad // tm, N_pad // tn)

    # --- column operand: resident in VMEM when small, else streamed ---------
    col_bytes = D * N_pad * in_itemsize
    resident = col_bytes <= resident_col_bytes
    if resident:
        kernel = functools.partial(_decoder_kernel_resident, tn=tn)
        col_spec = pl.BlockSpec((D, N_pad), lambda i, j: (0, 0))  # fetched once
        col_hbm_reads = col_bytes
        col_vmem = 2 * col_bytes
    else:
        kernel = _decoder_kernel_streamed
        col_spec = pl.BlockSpec((D, tn), lambda i, j: (0, j))
        col_hbm_reads = grid[0] * col_bytes  # re-streamed once per row panel
        col_vmem = 2 * D * tn * in_itemsize
    # TODO(synk): for very large D (>~2K; sooner on v7x's 64 MiB VMEM) add a K
    # grid axis + f32 VMEM accumulator so the (tm, D)/(D, tn) panels stay bounded.

    # Explicit VMEM budget: double-buffered row panels + column operand +
    # output tiles, with headroom, capped at v7x's 64 MiB physical VMEM.
    vmem_bytes = (
        2 * tm * D * in_itemsize  # row panels
        + col_vmem                # column operand
        + 2 * tm * tn * out_itemsize  # output tiles
    )
    vmem_limit = int(min(max(vmem_bytes + (8 << 20), 16 << 20), 64 << 20))

    cost = pl.CostEstimate(
        flops=2 * N_pad * N_pad * D,
        transcendentals=N_pad * N_pad,  # one tanh per output element
        bytes_accessed=(
            N_pad * D * in_itemsize       # row panels, each read once
            + col_hbm_reads               # resident (once) or re-streamed
            + N_pad * N_pad * out_itemsize
        ),
    )

    adj = pl.pallas_call(
        kernel,
        out_shape=jax.ShapeDtypeStruct((N_pad, N_pad), out_dtype),
        grid_spec=pltpu.PrefetchScalarGridSpec(
            num_scalar_prefetch=0,
            grid=grid,
            in_specs=[
                pl.BlockSpec((tm, D), lambda i, j: (i, 0)),  # rows of the output
                col_spec,                                     # cols of the output
            ],
            out_specs=pl.BlockSpec((tm, tn), lambda i, j: (i, j)),
        ),
        compiler_params=pltpu.CompilerParams(
            dimension_semantics=("parallel", "parallel"),
            vmem_limit_bytes=vmem_limit,
        ),
        cost_estimate=cost,
    )(z_p, zt)

    return adj if N_pad == N else adj[:N, :N]


if __name__ == "__main__":
    key = jax.random.PRNGKey(0)

    # --- f32 eval-mode path (resident column operand) -----------------------
    N, D = 256, 128
    z = jax.random.normal(key, (N, D), dtype=jnp.float32)
    adj = jax.block_until_ready(inner_product_decoder(z))
    ref = jax.nn.sigmoid(z @ z.T)
    assert adj.shape == (N, N) and adj.dtype == jnp.float32
    assert jnp.allclose(adj, ref, atol=1e-5, rtol=1e-5)

    # --- forced streamed-column path (same numerics) -------------------------
    adj_s = jax.block_until_ready(inner_product_decoder(z, resident_col_bytes=0))
    assert jnp.allclose(adj_s, ref, atol=1e-5, rtol=1e-5)

    # --- padded-N path (N not a multiple of 128) ------------------------------
    N2, D2 = 200, 64
    z2 = jax.random.normal(jax.random.PRNGKey(0), (N2, D2), dtype=jnp.float32)
    adj2 = jax.block_until_ready(inner_product_decoder(z2))
    ref2 = jax.nn.sigmoid(z2 @ z2.T)
    assert adj2.shape == (N2, N2)
    assert jnp.allclose(adj2, ref2, atol=1e-5, rtol=1e-5)

    # --- bf16 inference path (bf16 MXU inputs, f32 accumulate, bf16 output) ---
    adj_bf16 = jax.block_until_ready(
        inner_product_decoder(z, compute_dtype=jnp.bfloat16, out_dtype=jnp.bfloat16)
    )
    assert adj_bf16.shape == (N, N) and adj_bf16.dtype == jnp.bfloat16
    assert float(jnp.max(jnp.abs(adj_bf16.astype(jnp.float32) - ref))) < 0.1

    print("KERNEL_OK")
</pallas_src>

<mosaic_0001>
module attributes {stable_mosaic.version = 11 : i64} {
  func.func @_decoder_kernel_resident(%arg0: i32, %arg1: i32, %arg2: memref<128x128xf32, #tpu.memory_space<vmem>>, %arg3: memref<128x256xf32, #tpu.memory_space<vmem>>, %arg4: memref<128x256xf32, #tpu.memory_space<vmem>>) attributes {dimension_semantics = [#tpu.dimension_semantics<parallel>, #tpu.dimension_semantics<parallel>], iteration_bounds = array<i64: 2, 1>, scalar_prefetch = 0 : i64, scratch_operands = 0 : i64, tpu.core_type = #tpu.core_type<tc>, window_params = [{transform_indices = @transform_0, window_bounds = array<i64: 128, 128>}, {pipeline_mode = #tpu.pipeline_mode<synchronous>, transform_indices = @transform_1, window_bounds = array<i64: 128, 256>}, {transform_indices = @transform_2, window_bounds = array<i64: 128, 256>}]} {
    %c256_i32 = arith.constant 256 : i32
    %0 = arith.muli %arg1, %c256_i32 : i32
    %1 = tpu.assume_multiple %0, 128 : i32
    %c0 = arith.constant 0 : index
    %c0_0 = arith.constant 0 : index
    %2 = vector.load %arg2[%c0, %c0_0] : memref<128x128xf32, #tpu.memory_space<vmem>>, vector<128x128xf32>
    %c0_1 = arith.constant 0 : index
    %3 = arith.index_cast %1 : i32 to index
    %4 = vector.load %arg3[%c0_1, %3] : memref<128x256xf32, #tpu.memory_space<vmem>>, vector<128x256xf32>
    %cst = arith.constant dense<0.000000e+00> : vector<128x256xf32>
    %5 = tpu.matmul %2, %4, %cst {dimension_numbers = #tpu.dot_dimension_numbers<[1], [0], [0], [1], [0, 0, 1, 1], [], []>} : vector<128x128xf32>, vector<128x256xf32>, vector<128x256xf32> -> vector<128x256xf32>
    %cst_2 = arith.constant 5.000000e-01 : f32
    %6 = vector.broadcast %cst_2 : f32 to vector<128x256xf32>
    %7 = arith.mulf %6, %5 : vector<128x256xf32>
    %8 = math.tanh %7 : vector<128x256xf32>
    %cst_3 = arith.constant 5.000000e-01 : f32
    %9 = vector.broadcast %cst_3 : f32 to vector<128x256xf32>
    %10 = arith.mulf %9, %8 : vector<128x256xf32>
    %cst_4 = arith.constant 5.000000e-01 : f32
    %11 = vector.broadcast %cst_4 : f32 to vector<128x256xf32>
    %12 = arith.addf %10, %11 : vector<128x256xf32>
    %c0_5 = arith.constant 0 : index
    %c0_6 = arith.constant 0 : index
    %13 = vector.load %arg4[%c0_5, %c0_6] : memref<128x256xf32, #tpu.memory_space<vmem>>, vector<128x256xf32>
    tpu.vector_store %arg4[%c0_5, %c0_6], %12 {strides = array<i32>} : memref<128x256xf32, #tpu.memory_space<vmem>>, vector<128x256xf32>,
    return
  }
  func.func @transform_0(%arg0: i32, %arg1: i32) -> (i32, i32) {
    %c0_i32 = arith.constant 0 : i32
    %c0_i32_0 = arith.constant 0 : i32
    return %arg0, %c0_i32 : i32, i32
  }
  func.func @transform_1(%arg0: i32, %arg1: i32) -> (i32, i32) {
    %c0_i32 = arith.constant 0 : i32
    %c0_i32_0 = arith.constant 0 : i32
    %c0_i32_1 = arith.constant 0 : i32
    return %c0_i32, %c0_i32_0 : i32, i32
  }
  func.func @transform_2(%arg0: i32, %arg1: i32) -> (i32, i32) {
    %c0_i32 = arith.constant 0 : i32
    return %arg0, %arg1 : i32, i32
  }
}

</mosaic_0001>

<bundles_post_ra>
// kernel: tpu_custom_call.1
= control target key start
LH: loop header
LB: loop body
LE: loop exit
PB: predicated region body
PF: predicated region fallthrough
CT: control target
= control target key end

     0   :  { %7 = vsyncpa [#allocation3], 0  ;;  %s1225_s0 = inlined_call_operand.hbm [shape: f32[256,128], index: 0, kind: input, shape index: {}]   ;;  %s1226_s1 = inlined_call_operand.hbm [shape: f32[128,256], index: 1, kind: input, shape index: {}]   ;;  %s1227_s2 = inlined_call_operand.hbm [shape: f32[256,256], index: 2, kind: output, shape index: {}]  }
   0x1   :  { %9 = vsyncpa [#allocation3 + $0x1], 0 }
   0x2   :  { %10 = vsyncpa [#allocation6], 0 }
   0x3   :  { %11 = vsyncpa [#allocation4], 0 }
   0x4   :  { %13 = vsyncpa [#allocation4 + $0x1], 0  ;;  %s1022_s9 = smov 0   ;;  %s1024_s10 = smov 0  }
   0x5   :  { %s1026_s11 = smov 0   ;;  %s1028_s12 = smov 0  }
   0x6   :  { %s1030_s13 = smov 0   ;;  %s1032_s14 = smov 0  }
   0x7 LB: > { %s656_s15 = sadd.s32 4294967295, %s998_s14   ;;  %s657_s16 = sadd.s32 4294967294, %s998_s14   ;;  %s998_s14 = sphi %s1032_s14, %s19_s14   ;;  %s994_s13 = sphi %s1030_s13, %s1239_s13   ;;  %s990_s12 = sphi %s1028_s12, %s1238_s12   ;;  %s986_s11 = sphi %s1026_s11, %s1237_s11   ;;  %s982_s10 = sphi %s1024_s10, %s1236_s10   ;;  %s978_s9 = sphi %s1022_s9, %s1235_s9  }
   0x8   : > { %p51_p0 = scmp.ne.s32.totalorder %s982_s10, %s978_s9  ;;  %p1056_p1 = scmp.eq.s32.totalorder %s656_s15, 0 }
   0x9   : > { %p1060_p2 = scmp.eq.s32.totalorder %s656_s15, 1  ;;  %p104_p3 = scmp.eq.s32.totalorder %s657_s16, 1 }
   0xa   : > { %p1066_p4 = por %p1056_p1, %p51_p0  ;;  %p658_p5 = scmp.ge.s32.totalorder %s998_s14, 1 }
   0xb   : > { %p1071_p6 = por %p104_p3, %p51_p0  ;;  %p111_p7 = scmp.lt.s32.totalorder %s998_s14, 3 }
   0xc   : > { %s122_s23 = sshll.u32 %s1226_s1, 4  ;;  %s1000_s25 = smov [#allocation5]   ;;  %s123_s23 = int_to_ptr.hbm [resolvable:$true] %s122_s23 }
   0xd   : > { %p1079_p8 = pnand %p658_p5, %p111_p7  ;;  %s124_s26 = sshll.u32 %s1000_s25, 4  ;;  %s125_s26 = int_to_ptr.vmem [resolvable:$true] %s124_s26 }
   0xe   : > { %p660_p11 = scmp.ge.s32.totalorder %s998_s14, 2  ;;  %s1001_s27 = smov 256  }
   0xf   : > { %p717_p9 = pneg %p1079_p8  ;;  %s1002_s28 = smov 16  }
  0x10   : > { %s31_s29 = sadd.s32 1, %s994_s13  ;;  %s38_s30 = sadd.s32 1, %s986_s11 }
  0x11   : > { %p718_p10 = pnand %p717_p9, %p1056_p1  ;;  %p33_p12 = scmp.ge.s32.totalorder %s31_s29, 2 }
  0x12   : > { %p45_p13 = scmp.ne.s32.totalorder %s986_s11, %s982_s10  ;;  %p46_p0 = scmp.eq.s32.totalorder %s998_s14, 0 }
  0x13   : > { %720 = dma.hbm_to_vmem [thread:$0]  (!%p718_p10), %s123_s23, 4096, %s125_s26, [#allocation6], %s1001_s27, %s1001_s27, %s1002_s28  }
  0x14   : > { %s1241_s29 = smov (%p33_p12, %s31_s29), 0  ;;  %p1095_p3 = por %p46_p0, %p45_p13 }
  0x15   : > { %p1101_p5 = por %p1060_p2, %p45_p13  ;;  %s35_s5 = ssub.s32 %s994_s13, %s1241_s29 }
  0x16   : > { %p730_p7 = scmp.lt.s32.totalorder %s998_s14, 2  ;;  %p36_p9 = scmp.eq.s32.totalorder %s35_s5, 0 }
  0x17   : > { %s138_s6 = sand.u32 1, %s986_s11   ;;  %s674_s15 = sshll.u32 %s994_s13, 7 }
  0x18   : > { %s661_s7 = sshll.u32 %s138_s6, 7  ;;  %s147_s22 = scalar_lea.hbm %s1225_s0, %s674_s15 }
  0x19   : > { %s1110_s8 = scalar_select %p36_p9, %s986_s11, %s38_s30  }
  0x1a   : > { %s142_s23 = scalar_lea.vmem [#allocation2], %s661_s7  ;;  %s148_s18 = sshll.u32 %s147_s22, 4  ;;  %s149_s18 = int_to_ptr.hbm [resolvable:$true] %s148_s18 }
  0x1b   : > { %s150_s25 = sshll.u32 %s142_s23, 4  ;;  %p722_p2 = pnand %p730_p7, %p1095_p3  ;;  %s151_s25 = int_to_ptr.vmem [resolvable:$true] %s150_s25 }
  0x1c   : > { %s139_s26 = scalar_lea.sflag [#allocation3], %s138_s6  ;;  %s1003_s27 = smov 128  }
  0x1d   : > { %s1004_s28 = smov 8   ;;  %162 = sbr.rel (%p1079_p8) target bundleno = 275 (0x113), region = 28 }
  0x1e   : > { %724 = dma.hbm_to_vmem [thread:$0]  (!%p722_p2), %s149_s18, 2048, %s151_s25, %s139_s26, %s1003_s27, %s1003_s27, %s1004_s28  }
  0x1f   : > { %s1121_s30 = sand.u32 (!%p1079_p8), 1, %s982_s10  }
  0x20   : > { %s665_s5 = sshll.u32 (!%p1079_p8), %s1121_s30, 7  ;;  %s165_s7 = scalar_lea.sflag (!%p1079_p8), [#allocation3], %s1121_s30 }
  0x21   : > { %s1125_s15 = scalar_lea.vmem (!%p1079_p8), [#allocation2], %s665_s5 }
  0x22   : > { %965 = dma.done.wait (%p1066_p4), %s165_s7, 2048  }
  0x23   : > { %967 = vsyncadd (%p1066_p4), %s165_s7, 4294965248 }
  0x24   : > { %969 = dma.done.wait (%p1056_p1), [#allocation6], 4096  }
  0x25   : > { %971 = vsyncadd (%p1056_p1), [#allocation6], 4294963200  ;;  %v249_v0 = vld [vmem:[#allocation5 + $0xf0] sm:$0xff]  ;;  %v250_v1 = vld [vmem:[#allocation5 + $0xf8] sm:$0xff]  ;;  %s667_s17 = sshll.u32 %s1121_s30, 8  ;;  %s676_s24 = sshll.u32 %s990_s12, 8 }
  0x26   : > { %v247_v2 = vld [vmem:[#allocation5 + $0xe0] sm:$0xff]  ;;  %677 = vmatpush.msra.mxu2 %v249_v0  ;;  %693 = vmatpush.msra.mxu3 %v250_v1  ;;  %v248_v3 = vld [vmem:[#allocation5 + $0xe8] sm:$0xff]  ;;  %v245_v4 = vld [vmem:[#allocation5 + $0xd0] sm:$0xff]  ;;  %s1152_s19 = scalar_lea.vmem [#allocation7], %s667_s17  ;;  %s556_s16 = scalar_lea.hbm %s1227_s2, %s676_s24 }
  0x27   : > { %v246_v5 = vld [vmem:[#allocation5 + $0xd8] sm:$0xff]  ;;  %251 = vmatpush.msra.mxu0 %v249_v0  ;;  %316 = vmatpush.msra.mxu1 %v250_v1  ;;  %v243_v6 = vld [vmem:[#allocation5 + $0xc0] sm:$0xff]  ;;  %v244_v7 = vld [vmem:[#allocation5 + $0xc8] sm:$0xff]  ;;  %s557_s12 = sshll.u32 %s1152_s19, 4  ;;  %s559_s21 = sshll.u32 %s556_s16, 4  ;;  %s558_s12 = int_to_ptr.vmem [resolvable:$true] %s557_s12  ;;  %s560_s21 = int_to_ptr.hbm [resolvable:$true] %s559_s21 }
  0x28   : > { %678 = vmatpush.msra.mxu2 %v247_v2  ;;  %694 = vmatpush.msra.mxu3 %v248_v3  ;;  %v241_v8 = vld [vmem:[#allocation5 + $0xb0] sm:$0xff]  ;;  %v242_v9 = vld [vmem:[#allocation5 + $0xb8] sm:$0xff]  ;;  %v239_v10 = vld [vmem:[#allocation5 + $0xa0] sm:$0xff]  ;;  %s542_s22 = scalar_lea.sflag [#allocation4], %s1121_s30  ;;  %s926_s23 = sshra.s32 %s560_s21, 4  ;;  %s927_s23 = int_to_ptr.hbm [resolvable:$true] %s926_s23 }
  0x29   : > { %252 = vmatpush.msra.mxu0 %v247_v2  ;;  %317 = vmatpush.msra.mxu1 %v248_v3  ;;  %v240_v11 = vld [vmem:[#allocation5 + $0xa8] sm:$0xff]  ;;  %v237_v12 = vld [vmem:[#allocation5 + $0x90] sm:$0xff]  ;;  %v238_v13 = vld [vmem:[#allocation5 + $0x98] sm:$0xff]  ;;  %s928_s25 = scalar_lea.hbm %s927_s23, 256  ;;  %s932_s27 = scalar_lea.hbm %s1227_s2, 512 }
  0x2a   : > { %679 = vmatpush.msra.mxu2 %v245_v4  ;;  %695 = vmatpush.msra.mxu3 %v246_v5  ;;  %v235_v14 = vld [vmem:[#allocation5 + $0x80] sm:$0xff]  ;;  %v236_v15 = vld [vmem:[#allocation5 + $0x88] sm:$0xff]  ;;  %v233_v16 = vld [vmem:[#allocation5 + $0x70] sm:$0xff]  ;;  %p929_p1 = scmp.ne.s32.totalorder %s927_s23, %s928_s25  ;;  %p933_p10 = scmp.lt.s32.totalorder %s927_s23, %s1227_s2 }
  0x2b   : > { %253 = vmatpush.msra.mxu0 %v245_v4  ;;  %318 = vmatpush.msra.mxu1 %v246_v5  ;;  %v234_v17 = vld [vmem:[#allocation5 + $0x78] sm:$0xff]  ;;  %v231_v18 = vld [vmem:[#allocation5 + $0x60] sm:$0xff]  ;;  %v232_v19 = vld [vmem:[#allocation5 + $0x68] sm:$0xff]  ;;  %p934_p12 = scmp.lt.s32.totalorder %s932_s27, %s928_s25 }
  0x2c   : > { %680 = vmatpush.msra.mxu2 %v243_v6  ;;  %696 = vmatpush.msra.mxu3 %v244_v7  ;;  %v229_v20 = vld [vmem:[#allocation5 + $0x50] sm:$0xff]  ;;  %v230_v21 = vld [vmem:[#allocation5 + $0x58] sm:$0xff]  ;;  %v227_v22 = vld [vmem:[#allocation5 + $0x40] sm:$0xff]  ;;  %p930_p4 = pnand %p929_p1, %p1101_p5 }
  0x2d   : > { %254 = vmatpush.msra.mxu0 %v243_v6  ;;  %319 = vmatpush.msra.mxu1 %v244_v7  ;;  %v228_v23 = vld [vmem:[#allocation5 + $0x48] sm:$0xff]  ;;  %v225_v24 = vld [vmem:[#allocation5 + $0x30] sm:$0xff]  ;;  %v226_v25 = vld [vmem:[#allocation5 + $0x38] sm:$0xff]  ;;  %p935_p13 = por %p934_p12, %p933_p10 }
  0x2e   : > { %681 = vmatpush.msra.mxu2 %v241_v8  ;;  %697 = vmatpush.msra.mxu3 %v242_v9  ;;  %v223_v26 = vld [vmem:[#allocation5 + $0x20] sm:$0xff]  ;;  %v224_v27 = vld [vmem:[#allocation5 + $0x28] sm:$0xff]  ;;  %v221_v28 = vld [vmem:[#allocation5 + $0x10] sm:$0xff]  ;;  %p931_p8 = pneg %p930_p4 }
  0x2f   : > { %255 = vmatpush.msra.mxu0 %v241_v8  ;;  %320 = vmatpush.msra.mxu1 %v242_v9  ;;  %v222_v29 = vld [vmem:[#allocation5 + $0x18] sm:$0xff]  ;;  %v219_v30 = vld [vmem:[#allocation5] sm:$0xff]  ;;  %v220_v31 = vld [vmem:[#allocation5 + $0x8] sm:$0xff] }
  0x30   : > { %682 = vmatpush.msra.mxu2 %v239_v10  ;;  %698 = vmatpush.msra.mxu3 %v240_v11  ;;  %v207_v32 = vld [vmem:[%s1125_s15 + $0x40] sm:$0xff]  ;;  %v208_v34 = vld [vmem:[%s1125_s15 + $0x48] sm:$0xff]  ;;  %v209_v36 = vld [vmem:[%s1125_s15 + $0x50] sm:$0xff]  ;;  %p936_p0 = pnand %p935_p13, %p931_p8 }
  0x31   : > { %256 = vmatpush.msra.mxu0 %v239_v10  ;;  %321 = vmatpush.msra.mxu1 %v240_v11  ;;  %v199_v33 = vld [vmem:[%s1125_s15] sm:$0xff]  ;;  %v200_v35 = vld [vmem:[%s1125_s15 + $0x8] sm:$0xff]  ;;  %v201_v37 = vld [vmem:[%s1125_s15 + $0x10] sm:$0xff] }
  0x32   : > { %683 = vmatpush.msra.mxu2 %v237_v12  ;;  %699 = vmatpush.msra.mxu3 %v238_v13  ;;  %v210_v38 = vld [vmem:[%s1125_s15 + $0x58] sm:$0xff]  ;;  %v211_v40 = vld [vmem:[%s1125_s15 + $0x60] sm:$0xff]  ;;  %v212_v42 = vld [vmem:[%s1125_s15 + $0x68] sm:$0xff] }
  0x33   : > { %257 = vmatpush.msra.mxu0 %v237_v12  ;;  %322 = vmatpush.msra.mxu1 %v238_v13  ;;  %v202_v39 = vld [vmem:[%s1125_s15 + $0x18] sm:$0xff]  ;;  %v203_v41 = vld [vmem:[%s1125_s15 + $0x20] sm:$0xff]  ;;  %v204_v43 = vld [vmem:[%s1125_s15 + $0x28] sm:$0xff] }
  0x34   : > { %684 = vmatpush.msra.mxu2 %v235_v14  ;;  %700 = vmatpush.msra.mxu3 %v236_v15  ;;  %v213_v44 = vld [vmem:[%s1125_s15 + $0x70] sm:$0xff]  ;;  %v214_v46 = vld [vmem:[%s1125_s15 + $0x78] sm:$0xff] }
  0x35   : > { %258 = vmatpush.msra.mxu0 %v235_v14  ;;  %323 = vmatpush.msra.mxu1 %v236_v15  ;;  %v205_v45 = vld [vmem:[%s1125_s15 + $0x30] sm:$0xff]  ;;  %v206_v47 = vld [vmem:[%s1125_s15 + $0x38] sm:$0xff] }
  0x36   : > { %685 = vmatpush.msra.mxu2 %v233_v16  ;;  %701 = vmatpush.msra.mxu3 %v234_v17 }
  0x37   : > { %259 = vmatpush.msra.mxu0 %v233_v16  ;;  %324 = vmatpush.msra.mxu1 %v234_v17 }
  0x38   : > { %686 = vmatpush.msra.mxu2 %v231_v18  ;;  %702 = vmatpush.msra.mxu3 %v232_v19 }
  0x39   : > { %260 = vmatpush.msra.mxu0 %v231_v18  ;;  %325 = vmatpush.msra.mxu1 %v232_v19 }
  0x3a   : > { %687 = vmatpush.msra.mxu2 %v229_v20  ;;  %703 = vmatpush.msra.mxu3 %v230_v21 }
  0x3b   : > { %261 = vmatpush.msra.mxu0 %v229_v20  ;;  %326 = vmatpush.msra.mxu1 %v230_v21 }
  0x3c   : > { %688 = vmatpush.msra.mxu2 %v227_v22  ;;  %704 = vmatpush.msra.mxu3 %v228_v23 }
  0x3d   : > { %262 = vmatpush.msra.mxu0 %v227_v22  ;;  %327 = vmatpush.msra.mxu1 %v228_v23 }
  0x3e   : > { %689 = vmatpush.msra.mxu2 %v225_v24  ;;  %705 = vmatpush.msra.mxu3 %v226_v25 }
  0x3f   : > { %263 = vmatpush.msra.mxu0 %v225_v24  ;;  %328 = vmatpush.msra.mxu1 %v226_v25 }
  0x40   : > { %690 = vmatpush.msra.mxu2 %v223_v26  ;;  %706 = vmatpush.msra.mxu3 %v224_v27 }
  0x41   : > { %264 = vmatpush.msra.mxu0 %v223_v26  ;;  %329 = vmatpush.msra.mxu1 %v224_v27 }
  0x42   : > { %691 = vmatpush.msra.mxu2 %v221_v28  ;;  %707 = vmatpush.msra.mxu3 %v222_v29 }
  0x43   : > { %265 = vmatpush.msra.mxu0 %v221_v28  ;;  %330 = vmatpush.msra.mxu1 %v222_v29 }
  0x44   : > { %692 = vmatpush.msra.mxu2 %v219_v30  ;;  %708 = vmatpush.msra.mxu3 %v220_v31 }
  0x45   : > { %291 = vmatmul.f32.vlgmr.msra.gmra.mxu2 %v207_v32  ;;  %356 = vmatmul.f32.vlgmr.msra.gmra.mxu3 %v207_v32 }
  0x46   : > { %266 = vmatpush.msra.mxu0 %v219_v30  ;;  %331 = vmatpush.msra.mxu1 %v220_v31 }
  0x47   : > { %267 = vmatmul.f32.vlgmr.msra.gmra.mxu0 %v199_v33  ;;  %332 = vmatmul.f32.vlgmr.msra.gmra.mxu1 %v199_v33 }
  0x4d   : > { %294 = vmatmul.f32.gmra.mxu2 %v208_v34  ;;  %359 = vmatmul.f32.gmra.mxu3 %v208_v34 }
  0x4f   : > { %270 = vmatmul.f32.gmra.mxu0 %v200_v35  ;;  %335 = vmatmul.f32.gmra.mxu1 %v200_v35 }
  0x55   : > { %297 = vmatmul.f32.gmra.mxu2 %v209_v36  ;;  %362 = vmatmul.f32.gmra.mxu3 %v209_v36 }
  0x57   : > { %273 = vmatmul.f32.gmra.mxu0 %v201_v37  ;;  %338 = vmatmul.f32.gmra.mxu1 %v201_v37 }
  0x5d   : > { %300 = vmatmul.f32.gmra.mxu2 %v210_v38  ;;  %365 = vmatmul.f32.gmra.mxu3 %v210_v38 }
  0x5f   : > { %276 = vmatmul.f32.gmra.mxu0 %v202_v39  ;;  %341 = vmatmul.f32.gmra.mxu1 %v202_v39 }
  0x65   : > { %303 = vmatmul.f32.gmra.mxu2 %v211_v40  ;;  %368 = vmatmul.f32.gmra.mxu3 %v211_v40 }
  0x67   : > { %279 = vmatmul.f32.gmra.mxu0 %v203_v41  ;;  %344 = vmatmul.f32.gmra.mxu1 %v203_v41 }
  0x6d   : > { %306 = vmatmul.f32.gmra.mxu2 %v212_v42  ;;  %371 = vmatmul.f32.gmra.mxu3 %v212_v42 }
  0x6f   : > { %282 = vmatmul.f32.gmra.mxu0 %v204_v43  ;;  %347 = vmatmul.f32.gmra.mxu1 %v204_v43 }
  0x75   : > { %309 = vmatmul.f32.gmra.mxu2 %v213_v44  ;;  %374 = vmatmul.f32.gmra.mxu3 %v213_v44 }
  0x77   : > { %285 = vmatmul.f32.gmra.mxu0 %v205_v45  ;;  %350 = vmatmul.f32.gmra.mxu1 %v205_v45 }
  0x7d   : > { %312 = vmatmul.f32.gmra.mxu2 %v214_v46  ;;  %377 = vmatmul.f32.gmra.mxu3 %v214_v46 }
  0x7f   : > { %288 = vmatmul.f32.gmra.mxu0 %v206_v47  ;;  %353 = vmatmul.f32.gmra.mxu1 %v206_v47 }
  0xc4   : > { %v268_v48 = vpop.f32.mrf.mxu0  ;;  %v333_v49 = vpop.f32.mrf.mxu1 }
  0xc5   : > { %v381_v50 = vmul.f32 0.5, %v268_v48  ;;  %v382_v51 = vmul.f32 0.5, %v333_v49 }
  0xc7   : > { %788 = vtanh.f32 %v381_v50 }
  0xc8   : > { %v292_v52 = vpop.f32.mrf.mxu2  ;;  %790 = vtanh.f32 %v382_v51  ;;  %v357_v53 = vpop.f32.mrf.mxu3 }
  0xc9   : > { %v397_v54 = vmul.f32 0.5, %v292_v52  ;;  %v398_v55 = vmul.f32 0.5, %v357_v53 }
  0xcb   : > { %792 = vtanh.f32 %v397_v54 }
  0xcc   : > { %794 = vtanh.f32 %v398_v55  ;;  %v271_v56 = vpop.f32.mrf.mxu0  ;;  %v336_v57 = vpop.f32.mrf.mxu1 }
  0xcd   : > { %v789_v58 = vpop.eup %788  ;;  %v383_v59 = vmul.f32 0.5, %v271_v56  ;;  %v384_v60 = vmul.f32 0.5, %v336_v57 }
  0xce   : > { %v791_v61 = vpop.eup %790  ;;  %v445_v62 = vmul.f32 0.5, %v789_v58 }
  0xcf   : > { %v446_v63 = vmul.f32 0.5, %v791_v61  ;;  %796 = vtanh.f32 %v383_v59 }
  0xd0   : > { %v477_v0 = vadd.f32 0.5, %v445_v62  ;;  %v295_v1 = vpop.f32.mrf.mxu2  ;;  %798 = vtanh.f32 %v384_v60  ;;  %v360_v2 = vpop.f32.mrf.mxu3 }
  0xd1   : > { %v793_v3 = vpop.eup %792  ;;  %v478_v4 = vadd.f32 0.5, %v446_v63  ;;  %v399_v5 = vmul.f32 0.5, %v295_v1  ;;  %v400_v6 = vmul.f32 0.5, %v360_v2 }
  0xd2   : > { %v795_v7 = vpop.eup %794  ;;  %509 = vst [vmem:[%s1152_s19] sm:$0xff] %v477_v0  ;;  %v461_v8 = vmul.f32 0.5, %v793_v3 }
  0xd3   : > { %510 = vst [vmem:[%s1152_s19 + $0x8] sm:$0xff] %v478_v4  ;;  %v462_v9 = vmul.f32 0.5, %v795_v7  ;;  %800 = vtanh.f32 %v399_v5 }
  0xd4   : > { %v493_v10 = vadd.f32 0.5, %v461_v8  ;;  %802 = vtanh.f32 %v400_v6  ;;  %v274_v11 = vpop.f32.mrf.mxu0  ;;  %v339_v12 = vpop.f32.mrf.mxu1 }
  0xd5   : > { %v797_v13 = vpop.eup %796  ;;  %v494_v14 = vadd.f32 0.5, %v462_v9  ;;  %v385_v15 = vmul.f32 0.5, %v274_v11  ;;  %v386_v16 = vmul.f32 0.5, %v339_v12 }
  0xd6   : > { %v799_v17 = vpop.eup %798  ;;  %525 = vst [vmem:[%s1152_s19 + $0x80] sm:$0xff] %v493_v10  ;;  %v447_v18 = vmul.f32 0.5, %v797_v13 }
  0xd7   : > { %526 = vst [vmem:[%s1152_s19 + $0x88] sm:$0xff] %v494_v14  ;;  %v448_v19 = vmul.f32 0.5, %v799_v17  ;;  %804 = vtanh.f32 %v385_v15 }
  0xd8   : > { %v479_v20 = vadd.f32 0.5, %v447_v18  ;;  %v298_v21 = vpop.f32.mrf.mxu2  ;;  %806 = vtanh.f32 %v386_v16  ;;  %v363_v22 = vpop.f32.mrf.mxu3 }
  0xd9   : > { %v801_v23 = vpop.eup %800  ;;  %v480_v24 = vadd.f32 0.5, %v448_v19  ;;  %v401_v25 = vmul.f32 0.5, %v298_v21  ;;  %v402_v26 = vmul.f32 0.5, %v363_v22 }
  0xda   : > { %v803_v27 = vpop.eup %802  ;;  %511 = vst [vmem:[%s1152_s19 + $0x10] sm:$0xff] %v479_v20  ;;  %v463_v28 = vmul.f32 0.5, %v801_v23 }
  0xdb   : > { %512 = vst [vmem:[%s1152_s19 + $0x18] sm:$0xff] %v480_v24  ;;  %v464_v29 = vmul.f32 0.5, %v803_v27  ;;  %808 = vtanh.f32 %v401_v25 }
  0xdc   : > { %v495_v30 = vadd.f32 0.5, %v463_v28  ;;  %810 = vtanh.f32 %v402_v26  ;;  %v277_v31 = vpop.f32.mrf.mxu0  ;;  %v342_v32 = vpop.f32.mrf.mxu1 }
  0xdd   : > { %v805_v33 = vpop.eup %804  ;;  %v496_v34 = vadd.f32 0.5, %v464_v29  ;;  %v387_v35 = vmul.f32 0.5, %v277_v31  ;;  %v388_v36 = vmul.f32 0.5, %v342_v32 }
  0xde   : > { %v807_v37 = vpop.eup %806  ;;  %527 = vst [vmem:[%s1152_s19 + $0x90] sm:$0xff] %v495_v30  ;;  %v449_v38 = vmul.f32 0.5, %v805_v33 }
  0xdf   : > { %528 = vst [vmem:[%s1152_s19 + $0x98] sm:$0xff] %v496_v34  ;;  %v450_v39 = vmul.f32 0.5, %v807_v37  ;;  %812 = vtanh.f32 %v387_v35 }
  0xe0   : > { %v481_v40 = vadd.f32 0.5, %v449_v38  ;;  %v301_v41 = vpop.f32.mrf.mxu2  ;;  %814 = vtanh.f32 %v388_v36  ;;  %v366_v42 = vpop.f32.mrf.mxu3 }
  0xe1   : > { %v809_v43 = vpop.eup %808  ;;  %v482_v44 = vadd.f32 0.5, %v450_v39  ;;  %v403_v45 = vmul.f32 0.5, %v301_v41  ;;  %v404_v46 = vmul.f32 0.5, %v366_v42 }
  0xe2   : > { %v811_v47 = vpop.eup %810  ;;  %513 = vst [vmem:[%s1152_s19 + $0x20] sm:$0xff] %v481_v40  ;;  %v465_v48 = vmul.f32 0.5, %v809_v43 }
  0xe3   : > { %514 = vst [vmem:[%s1152_s19 + $0x28] sm:$0xff] %v482_v44  ;;  %v466_v49 = vmul.f32 0.5, %v811_v47  ;;  %816 = vtanh.f32 %v403_v45 }
  0xe4   : > { %v497_v50 = vadd.f32 0.5, %v465_v48  ;;  %818 = vtanh.f32 %v404_v46  ;;  %v280_v51 = vpop.f32.mrf.mxu0  ;;  %v345_v52 = vpop.f32.mrf.mxu1 }
  0xe5   : > { %v813_v53 = vpop.eup %812  ;;  %v498_v54 = vadd.f32 0.5, %v466_v49  ;;  %v389_v55 = vmul.f32 0.5, %v280_v51  ;;  %v390_v56 = vmul.f32 0.5, %v345_v52 }
  0xe6   : > { %v815_v57 = vpop.eup %814  ;;  %529 = vst [vmem:[%s1152_s19 + $0xa0] sm:$0xff] %v497_v50  ;;  %v451_v58 = vmul.f32 0.5, %v813_v53 }
  0xe7   : > { %530 = vst [vmem:[%s1152_s19 + $0xa8] sm:$0xff] %v498_v54  ;;  %v452_v59 = vmul.f32 0.5, %v815_v57  ;;  %820 = vtanh.f32 %v389_v55 }
  0xe8   : > { %v483_v60 = vadd.f32 0.5, %v451_v58  ;;  %v304_v61 = vpop.f32.mrf.mxu2  ;;  %822 = vtanh.f32 %v390_v56  ;;  %v369_v62 = vpop.f32.mrf.mxu3 }
  0xe9   : > { %v817_v63 = vpop.eup %816  ;;  %v484_v0 = vadd.f32 0.5, %v452_v59  ;;  %v405_v1 = vmul.f32 0.5, %v304_v61  ;;  %v406_v2 = vmul.f32 0.5, %v369_v62 }
  0xea   : > { %v819_v3 = vpop.eup %818  ;;  %515 = vst [vmem:[%s1152_s19 + $0x30] sm:$0xff] %v483_v60  ;;  %v467_v4 = vmul.f32 0.5, %v817_v63 }
  0xeb   : > { %516 = vst [vmem:[%s1152_s19 + $0x38] sm:$0xff] %v484_v0  ;;  %v468_v5 = vmul.f32 0.5, %v819_v3  ;;  %824 = vtanh.f32 %v405_v1 }
  0xec   : > { %v499_v6 = vadd.f32 0.5, %v467_v4  ;;  %826 = vtanh.f32 %v406_v2  ;;  %v283_v7 = vpop.f32.mrf.mxu0  ;;  %v348_v8 = vpop.f32.mrf.mxu1 }
  0xed   : > { %v821_v9 = vpop.eup %820  ;;  %v500_v10 = vadd.f32 0.5, %v468_v5  ;;  %v391_v11 = vmul.f32 0.5, %v283_v7  ;;  %v392_v12 = vmul.f32 0.5, %v348_v8 }
  0xee   : > { %v823_v13 = vpop.eup %822  ;;  %531 = vst [vmem:[%s1152_s19 + $0xb0] sm:$0xff] %v499_v6  ;;  %v453_v14 = vmul.f32 0.5, %v821_v9 }
  0xef   : > { %532 = vst [vmem:[%s1152_s19 + $0xb8] sm:$0xff] %v500_v10  ;;  %v454_v15 = vmul.f32 0.5, %v823_v13  ;;  %828 = vtanh.f32 %v391_v11 }
  0xf0   : > { %v485_v16 = vadd.f32 0.5, %v453_v14  ;;  %v307_v17 = vpop.f32.mrf.mxu2  ;;  %830 = vtanh.f32 %v392_v12  ;;  %v372_v18 = vpop.f32.mrf.mxu3 }
  0xf1   : > { %v825_v19 = vpop.eup %824  ;;  %v486_v20 = vadd.f32 0.5, %v454_v15  ;;  %v407_v21 = vmul.f32 0.5, %v307_v17  ;;  %v408_v22 = vmul.f32 0.5, %v372_v18 }
  0xf2   : > { %v827_v23 = vpop.eup %826  ;;  %517 = vst [vmem:[%s1152_s19 + $0x40] sm:$0xff] %v485_v16  ;;  %v469_v24 = vmul.f32 0.5, %v825_v19 }
  0xf3   : > { %518 = vst [vmem:[%s1152_s19 + $0x48] sm:$0xff] %v486_v20  ;;  %v470_v25 = vmul.f32 0.5, %v827_v23  ;;  %832 = vtanh.f32 %v407_v21 }
  0xf4   : > { %v501_v26 = vadd.f32 0.5, %v469_v24  ;;  %834 = vtanh.f32 %v408_v22  ;;  %v286_v27 = vpop.f32.mrf.mxu0  ;;  %v351_v28 = vpop.f32.mrf.mxu1 }
  0xf5   : > { %v829_v29 = vpop.eup %828  ;;  %v502_v30 = vadd.f32 0.5, %v470_v25  ;;  %v393_v31 = vmul.f32 0.5, %v286_v27  ;;  %v394_v32 = vmul.f32 0.5, %v351_v28 }
  0xf6   : > { %v831_v33 = vpop.eup %830  ;;  %533 = vst [vmem:[%s1152_s19 + $0xc0] sm:$0xff] %v501_v26  ;;  %v455_v34 = vmul.f32 0.5, %v829_v29 }
  0xf7   : > { %534 = vst [vmem:[%s1152_s19 + $0xc8] sm:$0xff] %v502_v30  ;;  %v456_v35 = vmul.f32 0.5, %v831_v33  ;;  %836 = vtanh.f32 %v393_v31 }
  0xf8   : > { %v487_v36 = vadd.f32 0.5, %v455_v34  ;;  %v310_v37 = vpop.f32.mrf.mxu2  ;;  %838 = vtanh.f32 %v394_v32  ;;  %v375_v38 = vpop.f32.mrf.mxu3 }
  0xf9   : > { %v833_v39 = vpop.eup %832  ;;  %v488_v40 = vadd.f32 0.5, %v456_v35  ;;  %v409_v41 = vmul.f32 0.5, %v310_v37  ;;  %v410_v42 = vmul.f32 0.5, %v375_v38 }
  0xfa   : > { %v835_v43 = vpop.eup %834  ;;  %519 = vst [vmem:[%s1152_s19 + $0x50] sm:$0xff] %v487_v36  ;;  %v471_v44 = vmul.f32 0.5, %v833_v39 }
  0xfb   : > { %520 = vst [vmem:[%s1152_s19 + $0x58] sm:$0xff] %v488_v40  ;;  %v472_v45 = vmul.f32 0.5, %v835_v43  ;;  %840 = vtanh.f32 %v409_v41 }
  0xfc   : > { %v503_v46 = vadd.f32 0.5, %v471_v44  ;;  %842 = vtanh.f32 %v410_v42  ;;  %v289_v47 = vpop.f32.mrf.mxu0  ;;  %v354_v48 = vpop.f32.mrf.mxu1 }
  0xfd   : > { %v837_v49 = vpop.eup %836  ;;  %v504_v50 = vadd.f32 0.5, %v472_v45  ;;  %v395_v51 = vmul.f32 0.5, %v289_v47  ;;  %v396_v52 = vmul.f32 0.5, %v354_v48 }
  0xfe   : > { %v839_v53 = vpop.eup %838  ;;  %535 = vst [vmem:[%s1152_s19 + $0xd0] sm:$0xff] %v503_v46  ;;  %v457_v54 = vmul.f32 0.5, %v837_v49 }
  0xff   : > { %536 = vst [vmem:[%s1152_s19 + $0xd8] sm:$0xff] %v504_v50  ;;  %v458_v55 = vmul.f32 0.5, %v839_v53  ;;  %844 = vtanh.f32 %v395_v51 }
 0x100   : > { %v489_v56 = vadd.f32 0.5, %v457_v54  ;;  %v313_v57 = vpop.f32.mrf.mxu2  ;;  %846 = vtanh.f32 %v396_v52  ;;  %v378_v58 = vpop.f32.mrf.mxu3 }
 0x101   : > { %v841_v59 = vpop.eup %840  ;;  %v490_v60 = vadd.f32 0.5, %v458_v55  ;;  %v411_v61 = vmul.f32 0.5, %v313_v57  ;;  %v412_v62 = vmul.f32 0.5, %v378_v58 }
 0x102   : > { %v843_v63 = vpop.eup %842  ;;  %521 = vst [vmem:[%s1152_s19 + $0x60] sm:$0xff] %v489_v56  ;;  %v473_v0 = vmul.f32 0.5, %v841_v59 }
 0x103   : > { %522 = vst [vmem:[%s1152_s19 + $0x68] sm:$0xff] %v490_v60  ;;  %v474_v1 = vmul.f32 0.5, %v843_v63  ;;  %848 = vtanh.f32 %v411_v61 }
 0x104   : > { %v505_v2 = vadd.f32 0.5, %v473_v0  ;;  %850 = vtanh.f32 %v412_v62 }
 0x105   : > { %v845_v3 = vpop.eup %844  ;;  %v506_v4 = vadd.f32 0.5, %v474_v1 }
 0x106   : > { %v847_v5 = vpop.eup %846  ;;  %537 = vst [vmem:[%s1152_s19 + $0xe0] sm:$0xff] %v505_v2  ;;  %v459_v6 = vmul.f32 0.5, %v845_v3 }
 0x107   : > { %538 = vst [vmem:[%s1152_s19 + $0xe8] sm:$0xff] %v506_v4  ;;  %v460_v7 = vmul.f32 0.5, %v847_v5 }
 0x108   : > { %v491_v8 = vadd.f32 0.5, %v459_v6 }
 0x109   : > { %v849_v9 = vpop.eup %848  ;;  %v492_v10 = vadd.f32 0.5, %v460_v7 }
 0x10a   : > { %v851_v11 = vpop.eup %850  ;;  %523 = vst [vmem:[%s1152_s19 + $0x70] sm:$0xff] %v491_v8  ;;  %v475_v12 = vmul.f32 0.5, %v849_v9 }
 0x10b   : > { %524 = vst [vmem:[%s1152_s19 + $0x78] sm:$0xff] %v492_v10  ;;  %v476_v13 = vmul.f32 0.5, %v851_v11 }
 0x10c   : > { %v507_v14 = vadd.f32 0.5, %v475_v12 }
 0x10d   : > { %v508_v15 = vadd.f32 0.5, %v476_v13 }
 0x10e   : > { %539 = vst [vmem:[%s1152_s19 + $0xf0] sm:$0xff] %v507_v14 }
 0x10f   : > { %540 = vst [vmem:[%s1152_s19 + $0xf8] sm:$0xff] %v508_v15 }
 0x110   : > { %939 = shalt.err (!%p936_p0)
}
 0x111   : > { %s1005_s30 = smov 256   ;;  %s1006_s7 = smov 16  }
 0x112   : > { %715 = dma.vmem_to_hbm [thread:$0]  (%p1101_p5), %s558_s12, 4096, %s560_s21, %s542_s22, %s1005_s30, %s1005_s30, %s1006_s7  }
 0x113 PF: > { %s574_s15 = sand.u32 1, %s978_s9   ;;  %p726_p3 = pnand %p660_p11, %p1071_p6 }
 0x114   : > { %s575_s17 = scalar_lea.sflag [#allocation4], %s574_s15 }
 0x115   : > { %p727_p7 = pneg %p726_p3 }
 0x117   : > { %973 = dma.done.wait (%p727_p7), %s575_s17, 4096  }
 0x118   : > { %975 = vsyncadd (%p727_p7), %s575_s17, 4294963200  ;;  %s19_s14 = sadd.s32 1, %s998_s14   ;;  %s1235_s9 = smov %s982_s10 }
 0x119   : > { %p16_p9 = scmp.ge.s32.totalorder %s19_s14, 4   ;;  %s1236_s10 = smov %s986_s11 }
 0x11a   : > { %s1237_s11 = smov %s1110_s8  ;;  %s1238_s12 = smov %s994_s13 }
 0x11b   : > { %s1239_s13 = smov %s1241_s29  ;;  %18 = sbr.rel (!%p16_p9) target bundleno = 7 (0x7), region = 78 }
 0x120   :  { %581 = vsyncpa [#allocation3], 1 }
 0x121   :  { %583 = vsyncpa [#allocation3 + $0x1], 1 }
 0x122   :  { %584 = vsyncpa [#allocation6], 1 }
 0x123   :  { %585 = vsyncpa [#allocation4], 1 }
 0x124   :  { %587 = vsyncpa [#allocation4 + $0x1], 1 }

</bundles_post_ra>
